<compile_context>
chip_gen: v6e
topology: v6e:2x2x1
jax: 0.10.0
libtpu: 0.0.40
codegen_flags: <defaults>
</compile_context>

<pallas_src>
import functools

import jax
import jax.numpy as jnp
from jax import lax
from jax.experimental import pallas as pl
from jax.experimental.pallas import tpu as pltpu


def _round_up(x, m):
    return (x + m - 1) // m * m


def _nt_dot(a, b, compute_dtype):
    """a @ b^T without materializing b.T: contract over the N (last) axis."""
    return lax.dot_general(
        a.astype(compute_dtype), b.astype(compute_dtype),
        dimension_numbers=(((1,), (1,)), ((), ())),
        preferred_element_type=jnp.float32)


def _softmax_rows(att):
    """Row softmax in fp32 (EUP approx reciprocal + one Newton step)."""
    m = jnp.max(att, axis=-1, keepdims=True)
    p = jnp.exp(att - m)
    s = jnp.sum(p, axis=-1, keepdims=True)
    inv = pl.reciprocal(s, approx=True)
    inv = inv * (2.0 - s * inv)
    return p * inv


# -----------------------------------------------------------------------------
# Fused kernel: grid (B, n_tiles); x read once; resident (C, N) output block.
# -----------------------------------------------------------------------------
def _fused_kernel(x_ref, w_ref, b_ref, o_ref, att_ref, *,
                  c, cs, n, tn, n_tiles, compute_dtype):
    cd = compute_dtype
    x = x_ref[0].astype(cd)                                    # (C, TN)

    # One stacked MXU pass for the three 1x1 convs, fp32 accumulation.
    qkv = jnp.dot(w_ref[...], x, preferred_element_type=jnp.float32) + b_ref[...]
    qkv = jnp.maximum(qkv, 0.0)                                # (3*cs, TN) f32
    q = qkv[0:c]
    k = qkv[cs:cs + c]
    v = qkv[2 * cs:2 * cs + c]                                 # (C, TN) f32 each

    if n_tiles == 1:
        # Whole spatial extent in one full-dim block: no accumulation, no mask.
        att = _softmax_rows(_nt_dot(q, k, cd)).astype(cd)
        o_ref[0] = jnp.dot(att, v.astype(cd),
                           preferred_element_type=jnp.float32).astype(o_ref.dtype)
        return

    nt = pl.program_id(1)
    last = n_tiles - 1
    rem = n - last * tn            # static remainder of the final tile

    @pl.when(nt == 0)
    def _init():
        att_ref[...] = jnp.zeros_like(att_ref)

    if rem == tn:
        att_ref[...] += _nt_dot(q, k, cd)
        o_ref[0, :, pl.ds(pl.multiple_of(nt * tn, tn), tn)] = v.astype(o_ref.dtype)
    else:
        @pl.when(nt < last)
        def _full_tile():
            att_ref[...] += _nt_dot(q, k, cd)
            o_ref[0, :, pl.ds(pl.multiple_of(nt * tn, tn), tn)] = (
                v.astype(o_ref.dtype))

        @pl.when(nt == last)
        def _partial_tile():
            # Columns past N: Pallas block padding is unspecified, and
            # ReLU(bias) on zero columns would otherwise leak into att.
            col = lax.broadcasted_iota(jnp.int32, (1, tn), 1)
            valid = col < rem
            att_ref[...] += _nt_dot(jnp.where(valid, q, 0.0),
                                    jnp.where(valid, k, 0.0), cd)
            o_ref[0, :, last * tn:n] = v[:, :rem].astype(o_ref.dtype)

    @pl.when(nt == last)
    def _finalize():
        att = _softmax_rows(att_ref[...]).astype(cd)
        n_full = n // tn

        def apply_chunk(t, carry):
            lo = pl.multiple_of(t * tn, tn)
            vv = o_ref[0, :, pl.ds(lo, tn)].astype(cd)
            o_ref[0, :, pl.ds(lo, tn)] = jnp.dot(
                att, vv, preferred_element_type=jnp.float32).astype(o_ref.dtype)
            return carry

        lax.fori_loop(0, n_full, apply_chunk, 0)
        if rem != tn:                                   # static leftover chunk
            vv = o_ref[0, :, last * tn:n].astype(cd)
            o_ref[0, :, last * tn:n] = jnp.dot(
                att, vv, preferred_element_type=jnp.float32).astype(o_ref.dtype)


# -----------------------------------------------------------------------------
# Two-pass fallback (only when the resident (C, N) block would not fit VMEM).
# -----------------------------------------------------------------------------
def _scores_kernel(x_ref, w_ref, b_ref, att_ref, *,
                   c, cs, n, tn, n_tiles, compute_dtype):
    cd = compute_dtype
    nt = pl.program_id(1)
    last = n_tiles - 1
    rem = n - last * tn

    @pl.when(nt == 0)
    def _init():
        att_ref[...] = jnp.zeros_like(att_ref)

    x = x_ref[0].astype(cd)
    qk = jnp.dot(w_ref[...], x, preferred_element_type=jnp.float32) + b_ref[...]
    qk = jnp.maximum(qk, 0.0)                                  # (2*cs, TN) f32
    q = qk[0:c]
    k = qk[cs:cs + c]

    if rem == tn:
        att_ref[0] += _nt_dot(q, k, cd)
    else:
        @pl.when(nt < last)
        def _full_tile():
            att_ref[0] += _nt_dot(q, k, cd)

        @pl.when(nt == last)
        def _partial_tile():
            col = lax.broadcasted_iota(jnp.int32, (1, tn), 1)
            valid = col < rem
            att_ref[0] += _nt_dot(jnp.where(valid, q, 0.0),
                                  jnp.where(valid, k, 0.0), cd)

    @pl.when(nt == last)
    def _finalize():
        att_ref[0] = _softmax_rows(att_ref[0])


def _apply_kernel(x_ref, att_ref, wv_ref, bv_ref, o_ref, *, compute_dtype):
    cd = compute_dtype
    x = x_ref[0].astype(cd)
    v = jnp.dot(wv_ref[...], x, preferred_element_type=jnp.float32) + bv_ref[...]
    v = jnp.maximum(v, 0.0)                                    # (C, TN) f32
    att = att_ref[0].astype(cd)                                # already softmaxed
    o_ref[0] = jnp.dot(att, v.astype(cd),
                       preferred_element_type=jnp.float32).astype(o_ref.dtype)


# -----------------------------------------------------------------------------
# Wrapper
# -----------------------------------------------------------------------------
def self_attention_block(x_nchw, params, *,
                         compute_dtype=jnp.bfloat16,
                         tile_target_bytes=1 << 20,
                         max_tile_n=None,
                         vmem_limit_bytes=48 * 1024 * 1024,
                         force_two_pass=False):
    """SelfAttentionBlock forward.  x_nchw: (B, C, H, W)."""
    b, c, h, w = x_nchw.shape
    n = h * w
    x = x_nchw.reshape(b, c, n)        # no pad, no dtype copy of the big tensor
    itemsize = x.dtype.itemsize
    cs = _round_up(c, 8)               # sublane-aligned sub-block inside stacked W

    # Adaptive, lane-aligned N tile; whole N as one full-dim block when it fits.
    tn_cap = (tile_target_bytes // max(1, c * itemsize)) // 128 * 128
    tn_cap = max(512, min(4096, tn_cap))
    if max_tile_n is not None:
        tn_cap = max(128, min(tn_cap, max_tile_n // 128 * 128))
    if n <= tn_cap:
        tn, n_tiles = n, 1
    else:
        tn, n_tiles = tn_cap, pl.cdiv(n, tn_cap)

    # Stacked 1x1-conv weights (3*cs, C): only this tiny tensor is padded so
    # each of Q/K/V starts at a sublane-aligned row.  x itself is never padded.
    def pad_rows(wt):
        return jnp.pad(wt, ((0, cs - c), (0, 0)))

    def pad_bias(bs):
        return jnp.pad(bs, (0, cs - c))

    wqkv = jnp.concatenate(
        [pad_rows(params["wq"]), pad_rows(params["wk"]), pad_rows(params["wv"])],
        axis=0).astype(compute_dtype)                                   # (3cs, C)
    bqkv = jnp.concatenate(
        [pad_bias(params["bq"]), pad_bias(params["bk"]), pad_bias(params["bv"])],
        axis=0).reshape(3 * cs, 1).astype(jnp.float32)                  # (3cs, 1)

    compiler_params = pltpu.CompilerParams(
        dimension_semantics=("parallel", "arbitrary"),
        vmem_limit_bytes=vmem_limit_bytes)

    # Fused-path VMEM budget: resident (C, N) output block (x2 buffering),
    # double-buffered x tiles, fp32 qkv temporaries, weights, att scratch.
    est_fused = (2 * c * n * itemsize + 2 * c * tn * itemsize
                 + 3 * (3 * cs * tn * 4) + 4 * c * c * 4
                 + (3 * cs * (c + 1)) * 4)
    use_fused = (not force_two_pass) and est_fused <= int(0.7 * vmem_limit_bytes)

    if use_fused:
        out = pl.pallas_call(
            functools.partial(_fused_kernel, c=c, cs=cs, n=n, tn=tn,
                              n_tiles=n_tiles, compute_dtype=compute_dtype),
            out_shape=jax.ShapeDtypeStruct((b, c, n), x.dtype),
            grid_spec=pltpu.PrefetchScalarGridSpec(
                num_scalar_prefetch=0,
                grid=(b, n_tiles),
                in_specs=[
                    pl.BlockSpec((1, c, tn), lambda i, t: (i, 0, t)),    # x tile
                    pl.BlockSpec((3 * cs, c), lambda i, t: (0, 0)),      # Wq|Wk|Wv
                    pl.BlockSpec((3 * cs, 1), lambda i, t: (0, 0)),      # bq|bk|bv
                ],
                out_specs=pl.BlockSpec((1, c, n), lambda i, t: (i, 0, 0)),  # resident
                scratch_shapes=[pltpu.VMEM((c, c), jnp.float32)],           # att acc
            ),
            compiler_params=compiler_params,
        )(x, wqkv, bqkv)
        return out.reshape(b, c, h, w)

    # ---- Two-pass fallback --------------------------------------------------
    wqk, bqk = wqkv[:2 * cs], bqkv[:2 * cs]
    wv = params["wv"].astype(compute_dtype)
    bv = params["bv"].reshape(c, 1).astype(jnp.float32)

    att = pl.pallas_call(
        functools.partial(_scores_kernel, c=c, cs=cs, n=n, tn=tn,
                          n_tiles=n_tiles, compute_dtype=compute_dtype),
        out_shape=jax.ShapeDtypeStruct((b, c, c), jnp.float32),
        grid_spec=pltpu.PrefetchScalarGridSpec(
            num_scalar_prefetch=0,
            grid=(b, n_tiles),
            in_specs=[
                pl.BlockSpec((1, c, tn), lambda i, t: (i, 0, t)),
                pl.BlockSpec((2 * cs, c), lambda i, t: (0, 0)),
                pl.BlockSpec((2 * cs, 1), lambda i, t: (0, 0)),
            ],
            out_specs=pl.BlockSpec((1, c, c), lambda i, t: (i, 0, 0)),
        ),
        compiler_params=compiler_params,
    )(x, wqk, bqk)

    out = pl.pallas_call(
        functools.partial(_apply_kernel, compute_dtype=compute_dtype),
        out_shape=jax.ShapeDtypeStruct((b, c, n), x.dtype),
        grid_spec=pltpu.PrefetchScalarGridSpec(
            num_scalar_prefetch=0,
            grid=(b, n_tiles),
            in_specs=[
                pl.BlockSpec((1, c, tn), lambda i, t: (i, 0, t)),
                pl.BlockSpec((1, c, c), lambda i, t: (i, 0, 0)),
                pl.BlockSpec((c, c), lambda i, t: (0, 0)),
                pl.BlockSpec((c, 1), lambda i, t: (0, 0)),
            ],
            out_specs=pl.BlockSpec((1, c, tn), lambda i, t: (i, 0, t)),
        ),
        compiler_params=pltpu.CompilerParams(
            dimension_semantics=("parallel", "parallel"),
            vmem_limit_bytes=vmem_limit_bytes),
    )(x, att, wv, bv)
    return out.reshape(b, c, h, w)


# -----------------------------------------------------------------------------
# Reference / test harness
# -----------------------------------------------------------------------------
def _reference(x_nchw, params, compute_dtype=jnp.float32):
    """Plain-JAX reference matching the PyTorch forward (with matching casts)."""
    b, c, h, w = x_nchw.shape
    n = h * w
    x = x_nchw.reshape(b, c, n).astype(compute_dtype)

    def conv_relu(wt, bs):
        y = jnp.einsum("oc,bcn->bon", wt.astype(compute_dtype), x,
                       preferred_element_type=jnp.float32)
        return jnp.maximum(y + bs.reshape(1, c, 1).astype(jnp.float32), 0.0)

    q = conv_relu(params["wq"], params["bq"]).astype(compute_dtype)
    k = conv_relu(params["wk"], params["bk"]).astype(compute_dtype)
    v = conv_relu(params["wv"], params["bv"])                      # f32

    att = jnp.einsum("bcn,bdn->bcd", q, k, preferred_element_type=jnp.float32)
    att = jax.nn.softmax(att, axis=-1)
    out = jnp.einsum("bcd,bdn->bcn", att.astype(compute_dtype),
                     v.astype(compute_dtype), preferred_element_type=jnp.float32)
    return out.reshape(b, c, h, w)


def _init_params(key, ch):
    """Deterministic init mimicking Conv2d(ch, ch, 1) param shapes."""
    ks = jax.random.split(key, 6)
    bound = 1.0 / jnp.sqrt(ch)

    def u(k, shape):
        return jax.random.uniform(k, shape, jnp.float32, -bound, bound)

    return {
        "wq": u(ks[0], (ch, ch)), "bq": u(ks[1], (ch,)),
        "wk": u(ks[2], (ch, ch)), "bk": u(ks[3], (ch,)),
        "wv": u(ks[4], (ch, ch)), "bv": u(ks[5], (ch,)),
    }


if __name__ == "__main__":
    key = jax.random.PRNGKey(0)
    kx, kp, kx2, kp2 = jax.random.split(key, 4)

    # 1) Typical shapes; fused path, single full-dim N block, default bf16 operands.
    B, C, H, W = 2, 4, 16, 16
    x = jax.random.normal(kx, (B, C, H, W), dtype=jnp.float32)
    params = _init_params(kp, C)

    out_bf = jax.block_until_ready(self_attention_block(x, params))
    ref_bf = _reference(x, params, compute_dtype=jnp.bfloat16)
    assert out_bf.shape == (B, C, H, W)
    assert jnp.allclose(out_bf, ref_bf, atol=2e-2, rtol=2e-2), (
        f"bf16 fused max abs err {jnp.max(jnp.abs(out_bf - ref_bf))}")

    # fp32-operand path against the exact reference.
    out_f32 = jax.block_until_ready(
        self_attention_block(x, params, compute_dtype=jnp.float32))
    ref_f32 = _reference(x, params, compute_dtype=jnp.float32)
    assert jnp.allclose(out_f32, ref_f32, atol=5e-4, rtol=5e-4), (
        f"f32 fused max abs err {jnp.max(jnp.abs(out_f32 - ref_f32))}")

    # 2) Unaligned C and N with a forced small tile: exercises multi-tile
    #    accumulation, the masked partial last tile, and the in-place finalize.
    B2, C2, H2, W2 = 1, 5, 30, 30            # N = 900, tn = 256 -> 4 tiles, rem = 132
    x2 = jax.random.normal(kx2, (B2, C2, H2, W2), dtype=jnp.float32)
    p2 = _init_params(kp2, C2)
    out2 = jax.block_until_ready(
        self_attention_block(x2, p2, compute_dtype=jnp.float32, max_tile_n=256))
    ref2 = _reference(x2, p2, compute_dtype=jnp.float32)
    assert jnp.allclose(out2, ref2, atol=2e-3, rtol=2e-3), (
        f"multi-tile fused max abs err {jnp.max(jnp.abs(out2 - ref2))}")

    # 3) Two-pass fallback path (used when the resident (C, N) block would not
    #    fit VMEM), forced here so it is exercised at small shapes.
    out3 = jax.block_until_ready(
        self_attention_block(x2, p2, compute_dtype=jnp.float32, max_tile_n=256,
                             force_two_pass=True))
    assert jnp.allclose(out3, ref2, atol=2e-3, rtol=2e-3), (
        f"two-pass fallback max abs err {jnp.max(jnp.abs(out3 - ref2))}")

    print("KERNEL_OK")
</pallas_src>

<mosaic_0001>
module attributes {stable_mosaic.version = 11 : i64} {
  func.func @_fused_kernel(%arg0: i32, %arg1: i32, %arg2: memref<1x4x256xf32, #tpu.memory_space<vmem>>, %arg3: memref<24x4xbf16, #tpu.memory_space<vmem>>, %arg4: memref<24x1xf32, #tpu.memory_space<vmem>>, %arg5: memref<1x4x256xf32, #tpu.memory_space<vmem>>, %arg6: memref<4x4xf32, #tpu.memory_space<vmem>>) attributes {dimension_semantics = [#tpu.dimension_semantics<parallel>, #tpu.dimension_semantics<arbitrary>], iteration_bounds = array<i64: 2, 1>, scalar_prefetch = 0 : i64, scratch_operands = 1 : i64, tpu.core_type = #tpu.core_type<tc>, window_params = [{transform_indices = @transform_0, window_bounds = array<i64: 1, 4, 256>}, {pipeline_mode = #tpu.pipeline_mode<synchronous>, transform_indices = @transform_1, window_bounds = array<i64: 24, 4>}, {pipeline_mode = #tpu.pipeline_mode<synchronous>, transform_indices = @transform_2, window_bounds = array<i64: 24, 1>}, {transform_indices = @transform_3, window_bounds = array<i64: 1, 4, 256>}]} {
    %c0 = arith.constant 0 : index
    %c0_0 = arith.constant 0 : index
    %c0_1 = arith.constant 0 : index
    %0 = vector.load %arg2[%c0, %c0_0, %c0_1] : memref<1x4x256xf32, #tpu.memory_space<vmem>>, vector<1x4x256xf32>
    %1 = vector.shape_cast %0 : vector<1x4x256xf32> to vector<4x256xf32>
    %2 = arith.truncf %1 : vector<4x256xf32> to vector<4x256xbf16>
    %c0_2 = arith.constant 0 : index
    %c0_3 = arith.constant 0 : index
    %3 = vector.load %arg3[%c0_2, %c0_3] : memref<24x4xbf16, #tpu.memory_space<vmem>>, vector<24x4xbf16>
    %cst = arith.constant dense<0.000000e+00> : vector<24x256xf32>
    %4 = tpu.matmul %3, %2, %cst {dimension_numbers = #tpu.dot_dimension_numbers<[1], [0], [0], [1], [0, 0, 1, 1], [], []>} : vector<24x4xbf16>, vector<4x256xbf16>, vector<24x256xf32> -> vector<24x256xf32>
    %c0_4 = arith.constant 0 : index
    %c0_5 = arith.constant 0 : index
    %5 = vector.load %arg4[%c0_4, %c0_5] : memref<24x1xf32, #tpu.memory_space<vmem>>, vector<24x1xf32>
    %6 = vector.broadcast %5 : vector<24x1xf32> to vector<24x256xf32>
    %7 = arith.addf %4, %6 : vector<24x256xf32>
    %cst_6 = arith.constant 0.000000e+00 : f32
    %8 = vector.broadcast %cst_6 : f32 to vector<24x256xf32>
    %9 = arith.maximumf %7, %8 : vector<24x256xf32>
    %10 = vector.extract_strided_slice %9 {offsets = [0, 0], sizes = [4, 256], strides = [1, 1]} : vector<24x256xf32> to vector<4x256xf32>
    %11 = vector.extract_strided_slice %9 {offsets = [8, 0], sizes = [4, 256], strides = [1, 1]} : vector<24x256xf32> to vector<4x256xf32>
    %12 = vector.extract_strided_slice %9 {offsets = [16, 0], sizes = [4, 256], strides = [1, 1]} : vector<24x256xf32> to vector<4x256xf32>
    %13 = arith.truncf %10 : vector<4x256xf32> to vector<4x256xbf16>
    %14 = arith.truncf %11 : vector<4x256xf32> to vector<4x256xbf16>
    %cst_7 = arith.constant dense<0.000000e+00> : vector<4x4xf32>
    %15 = tpu.matmul %13, %14, %cst_7 {dimension_numbers = #tpu.dot_dimension_numbers<[1], [1], [0], [0], [0, 0, 1, 0], [], []>} : vector<4x256xbf16>, vector<4x256xbf16>, vector<4x4xf32> -> vector<4x4xf32>
    %cst_8 = arith.constant dense<0xFF800000> : vector<4xf32>
    %16 = vector.multi_reduction <maximumf>, %15, %cst_8 [1] : vector<4x4xf32> to vector<4xf32>
    %17 = vector.shape_cast %16 : vector<4xf32> to vector<4x1xf32>
    %18 = vector.broadcast %17 : vector<4x1xf32> to vector<4x4xf32>
    %19 = arith.subf %15, %18 : vector<4x4xf32>
    %20 = math.exp %19 : vector<4x4xf32>
    %cst_9 = arith.constant dense<0.000000e+00> : vector<4xf32>
    %21 = vector.multi_reduction <add>, %20, %cst_9 [1] : vector<4x4xf32> to vector<4xf32>
    %22 = vector.shape_cast %21 : vector<4xf32> to vector<4x1xf32>
    %23 = tpu.reciprocal %22 {approx = true} : vector<4x1xf32> -> vector<4x1xf32>
    %24 = arith.mulf %22, %23 : vector<4x1xf32>
    %cst_10 = arith.constant 2.000000e+00 : f32
    %25 = vector.broadcast %cst_10 : f32 to vector<4x1xf32>
    %26 = arith.subf %25, %24 : vector<4x1xf32>
    %27 = arith.mulf %23, %26 : vector<4x1xf32>
    %28 = vector.broadcast %27 : vector<4x1xf32> to vector<4x4xf32>
    %29 = arith.mulf %20, %28 : vector<4x4xf32>
    %30 = arith.truncf %29 : vector<4x4xf32> to vector<4x4xbf16>
    %31 = arith.truncf %12 : vector<4x256xf32> to vector<4x256xbf16>
    %cst_11 = arith.constant dense<0.000000e+00> : vector<4x256xf32>
    %32 = tpu.matmul %30, %31, %cst_11 {dimension_numbers = #tpu.dot_dimension_numbers<[1], [0], [0], [1], [0, 0, 1, 1], [], []>} : vector<4x4xbf16>, vector<4x256xbf16>, vector<4x256xf32> -> vector<4x256xf32>
    %c0_12 = arith.constant 0 : index
    %c0_13 = arith.constant 0 : index
    %c0_14 = arith.constant 0 : index
    %33 = vector.load %arg5[%c0_12, %c0_13, %c0_14] : memref<1x4x256xf32, #tpu.memory_space<vmem>>, vector<1x4x256xf32>
    %34 = vector.shape_cast %33 : vector<1x4x256xf32> to vector<4x256xf32>
    %35 = vector.shape_cast %32 : vector<4x256xf32> to vector<1x4x256xf32>
    tpu.vector_store %arg5[%c0_12, %c0_13, %c0_14], %35 {strides = array<i32>} : memref<1x4x256xf32, #tpu.memory_space<vmem>>, vector<1x4x256xf32>,
    return
  }
  func.func @transform_0(%arg0: i32, %arg1: i32) -> (i32, i32, i32) {
    %c0_i32 = arith.constant 0 : i32
    %c0_i32_0 = arith.constant 0 : i32
    return %arg0, %c0_i32, %arg1 : i32, i32, i32
  }
  func.func @transform_1(%arg0: i32, %arg1: i32) -> (i32, i32) {
    %c0_i32 = arith.constant 0 : i32
    %c0_i32_0 = arith.constant 0 : i32
    %c0_i32_1 = arith.constant 0 : i32
    return %c0_i32, %c0_i32_0 : i32, i32
  }
  func.func @transform_2(%arg0: i32, %arg1: i32) -> (i32, i32) {
    %c0_i32 = arith.constant 0 : i32
    %c0_i32_0 = arith.constant 0 : i32
    %c0_i32_1 = arith.constant 0 : i32
    return %c0_i32, %c0_i32_0 : i32, i32
  }
  func.func @transform_3(%arg0: i32, %arg1: i32) -> (i32, i32, i32) {
    %c0_i32 = arith.constant 0 : i32
    %c0_i32_0 = arith.constant 0 : i32
    %c0_i32_1 = arith.constant 0 : i32
    return %arg0, %c0_i32, %c0_i32_0 : i32, i32, i32
  }
}

</mosaic_0001>

<bundles_post_ra>
// kernel: tpu_custom_call.1
= control target key start
LH: loop header
LB: loop body
LE: loop exit
PB: predicated region body
PF: predicated region fallthrough
CT: control target
= control target key end

     0   :  { %8 = vsyncpa [#allocation4], 0  ;;  %s828_s0 = inlined_call_operand.vmem [shape: f32[2,4,256], index: 0, kind: input, shape index: {}]   ;;  %s829_s1 = inlined_call_operand.vmem [shape: bf16[24,4], index: 1, kind: input, shape index: {}]   ;;  %s830_s2 = inlined_call_operand.vmem [shape: f32[24,1], index: 2, kind: input, shape index: {}]   ;;  %s831_s3 = inlined_call_operand.hbm [shape: f32[2,4,256], index: 3, kind: output, shape index: {}]  }
   0x1   :  { %10 = vsyncpa [#allocation4 + $0x1], 0  ;;  %s695_s12 = smov 0   ;;  %s697_s13 = smov 0  }
   0x2   :  { %s699_s14 = smov 0   ;;  %s701_s15 = smov 0  }
   0x3   :  { %s703_s16 = smov 0   ;;  %s705_s17 = smov 0  }
   0x4 LB: > { %s509_s18 = sadd.s32 4294967295, %s671_s17   ;;  %s510_s19 = sadd.s32 4294967294, %s671_s17   ;;  %s671_s17 = sphi %s705_s17, %s16_s17   ;;  %s667_s16 = sphi %s703_s16, %s838_s16   ;;  %s663_s15 = sphi %s701_s15, %s837_s15   ;;  %s659_s14 = sphi %s699_s14, %s836_s14   ;;  %s655_s13 = sphi %s697_s13, %s835_s13   ;;  %s651_s12 = sphi %s695_s12, %s834_s12  }
   0x5   : > { %s28_s20 = sadd.s32 1, %s667_s16  ;;  %s105_s21 = sadd.s32 1, %s659_s14 }
   0x6   : > { %p30_p0 = scmp.ge.s32.totalorder %s28_s20, 2  ;;  %p115_p1 = scmp.ne.s32.totalorder %s659_s14, %s655_s13 }
   0x7   : > { %p116_p2 = scmp.eq.s32.totalorder %s509_s18, 1  ;;  %p121_p3 = scmp.ne.s32.totalorder %s655_s13, %s651_s12 }
   0x8   : > { %s840_s20 = smov (%p30_p0, %s28_s20), 0  ;;  %p122_p5 = scmp.eq.s32.totalorder %s510_s19, 1 }
   0x9   : > { %p735_p4 = por %p116_p2, %p115_p1  ;;  %s102_s23 = ssub.s32 %s667_s16, %s840_s20 }
   0xa   : > { %p513_p6 = scmp.ge.s32.totalorder %s671_s17, 1  ;;  %p103_p7 = scmp.eq.s32.totalorder %s102_s23, 0 }
   0xb   : > { %p742_p8 = por %p122_p5, %p121_p3  ;;  %p159_p9 = scmp.lt.s32.totalorder %s671_s17, 3 }
   0xc   : > { %s748_s25 = scalar_select %p103_p7, %s659_s14, %s105_s21  }
   0xd   : > { %p160_p10 = pnand %p513_p6, %p159_p9 }
   0xe   : > { %p188_p11 = scmp.lt.s32.totalorder (!%p160_p10), %s663_s15, 1  ;;  %s184_s21 = sand.u32 (!%p160_p10), 1, %s655_s13  }
   0xf   : > { %163 = sbr.rel (%p160_p10) target bundleno = 970 (0x3ca), region = 32  ;;  %s514_s23 = sshll.u32 (!%p160_p10), %s184_s21, 3 }
  0x10   : > { %s530_s26 = sshll.u32 (!%p160_p10), %s663_s15, 7  ;;  %s186_s27 = scalar_lea.vmem (!%p160_p10), [#allocation3], %s514_s23 }
  0x11   : > { %s422_s5 = scalar_lea.sflag (!%p160_p10), [#allocation4], %s184_s21 }
  0x14   : > { %v673_v0 = vmov 0   ;;  %v208_v1 = vld [vmem:[%s830_s2 + $0x8] sm:$0xff]  ;;  %s189_s28 = scalar_select %p188_p11, %s663_s15, 1  ;;  %v207_v2 = vld [vmem:[%s830_s2] sm:$0xff]  ;;  %vm240_vm0 = vcmask 1041408   ;;  %v209_v6 = vld [vmem:[%s830_s2 + $0x10] sm:$0xff] }
  0x15   : > { %279 = vmatprep.mubr.bf16.mxu0 %v673_v0  ;;  %587 = vset.pattern.permute.xlu0 %v673_v0  ;;  %v589_v9 = vld [vmem:[%s829_s1] sm:$0xff]   ;;  %vm233_vm1 = vcmask 31744   ;;  %v590_v10 = vld [vmem:[%s829_s1 + $0x8] ss:$0 sps:$4 sm:$0xff]   ;;  %vm348_vm2 = vcmask 27648   ;;  %s674_s15 = smov [#allocation3]  }
  0x16   : > { %217 = vperm.xlu0 %587, %v208_v1   ;;  %s529_s4 = sshll.u32 %s189_s28, 3  ;;  %s436_s28 = sshll.u32 %s186_s27, 4  ;;  %s784_s28 = int_to_ptr.vmem [resolvable:$true] %s436_s28 }
  0x17   : > { %s195_s7 = scalar_lea.vmem %s828_s0, %s529_s4  ;;  %s782_s4 = scalar_lea.hbm %s831_s3, %s530_s26 }
  0x18   : > { %v198_v3 = vld [vmem:[%s195_s7] sm:$0xff]  ;;  %s595_s6 = scalar_lea.vmem %s784_s28, 128  ;;  %s599_s7 = sshll.u32 %s674_s15, 4  ;;  %s600_s7 = int_to_ptr.vmem [resolvable:$false] %s599_s7 }
  0x19   : > { %v200_v4 = vcombine.high %v198_v3, %v198_v3  ;;  %v202_v5 = vpack.c.bf16 %v198_v3, %v198_v3  ;;  %p596_p12 = scmp.ne.s32.totalorder %s784_s28, %s595_s6  ;;  %s601_s8 = scalar_lea.vmem %s600_s7, 256 }
  0x1a   : > { %212 = vperm.xlu0 %587, %v207_v2   ;;  %p602_p1 = scmp.lt.s32.totalorder %s784_s28, %s600_s7  ;;  %p603_p2 = scmp.lt.s32.totalorder %s601_s8, %s595_s6 }
  0x1b   : > { %v203_v7 = vpack.c.bf16 %v200_v4, %v200_v4  ;;  %v242_v8 = vsel %vm240_vm0, %v202_v5, 0  ;;  %p597_p13 = pnand %p596_p12, %p735_p4 }
  0x1c   : > { %p604_p3 = por %p603_p2, %p602_p1 }
  0x1d   : > { %519 = vmatprep.subr.msk.bf16.mxu0 %vm240_vm0, %v203_v7  ;;  %p598_p0 = pneg %p597_p13 }
  0x1e   : > { %222 = vperm.xlu0 %587, %v209_v6   ;;  %262 = vmatpush1.bf16.msra.mxu0 %v242_v8 }
  0x1f   : > { %p605_p5 = pnand %p604_p3, %p598_p0 }
  0x21   : > { %520 = vmatmul.mubr.msk.bf16.vlgmr.msra.gmra.mxu0 %vm233_vm1, %v589_v9 }
  0x22   : > { %289 = vmatprep.mubr.bf16.mxu0 %v673_v0 }
  0x29   : > { %521 = vmatmul.mubr.msk.bf16.gmra.mxu0 %vm233_vm1, %v590_v10 }
  0x91   : > { %v218_v11 = vpop.permute.xlu0 %217 }
  0x95   : > { %v213_v13 = vpop.permute.xlu0 %212 }
  0x99   : > { %v223_v23 = vpop.permute.xlu0 %222 }
  0xe1   : > { %v281_v12 = vpop.f32.mrf.mxu0 }
  0xe2   : > { %v282_v28 = vadd.f32 %v281_v12, %v213_v13 }
  0xe3   : > { %v283_v14 = vpop.f32.mrf.mxu0 }
  0xe4   : > { %v284_v15 = vadd.f32 %v283_v14, %v213_v13  ;;  %v298_v36 = vmax.f32 %v282_v28, 0.0 }
  0xe5   : > { %v285_v16 = vpop.f32.mrf.mxu0 }
  0xe6   : > { %v286_v17 = vadd.f32 %v285_v16, %v218_v11  ;;  %v299_v18 = vmax.f32 %v284_v15, 0.0  ;;  %v304_v39 = vpack.c.bf16 %v298_v36, %v298_v36 }
  0xe7   : > { %v287_v19 = vpop.f32.mrf.mxu0 }
  0xe8   : > { %v288_v20 = vadd.f32 %v287_v19, %v218_v11  ;;  %v305_v21 = vpack.c.bf16 %v299_v18, %v299_v18  ;;  %v300_v22 = vmax.f32 %v286_v17, 0.0 }
  0xe9   : > { %v291_v24 = vpop.f32.mrf.mxu0 }
  0xea   : > { %v292_v25 = vadd.f32 %v291_v24, %v223_v23  ;;  %340 = vmatprep.mubr.bf16.mxu1 %v305_v21  ;;  %v301_v26 = vmax.f32 %v288_v20, 0.0  ;;  %v306_v31 = vpack.c.bf16 %v300_v22, %v300_v22 }
  0xeb   : > { %v293_v27 = vpop.f32.mrf.mxu0 }
  0xec   : > { %v294_v29 = vadd.f32 %v293_v27, %v223_v23  ;;  %v307_v30 = vpack.c.bf16 %v301_v26, %v301_v26  ;;  %v302_v33 = vmax.f32 %v292_v25, 0.0 }
  0xed   : > { %v295_v32 = vpop.f32.mrf.mxu0 }
  0xee   : > { %v303_v34 = vmax.f32 %v294_v29, 0.0  ;;  %322 = vmatprep.subr.bf16.mxu1 %v307_v30  ;;  %v364_v38 = vpack.c.bf16 %v302_v33, %v302_v33 }
  0xef   : > { %323 = vmatpush1.bf16.xpose.msra.mxu1 %v306_v31  ;;  %v296_v35 = vpop.f32.mrf.mxu0 }
  0xf0   : > { %v365_v37 = vpack.c.bf16 %v303_v34, %v303_v34  ;;  %v370_v40 = vsel %vm240_vm0, %v364_v38, 0 }
  0xf2   : > { %522 = vmatprep.subr.msk.bf16.mxu1 %vm240_vm0, %v365_v37 }
  0xf6   : > { %341 = vmatmul.mubr.bf16.vlgmr.msra.gmra.mxu1 %v304_v39 }
  0xf7   : > { %390 = vmatpush1.bf16.msra.mxu1 %v370_v40  ;;  %407 = vmatprep.mubr.bf16.mxu1 %v673_v0 }
 0x1b6   : > { %v342_v41 = vpop.f32.mrf.mxu1 }
 0x1b7   : > { %v349_v42 = vsel %vm348_vm2, %v342_v41, -inf }
 0x1b8   : > { %350 = vmax.xlane.f32.xlu1 %v349_v42  ;;  %v344_v43 = vpop.f32.mrf.mxu1 }
 0x1ba   : > { %v345_v44 = vpop.f32.mrf.mxu1 }
 0x1bc   : > { %v346_v45 = vpop.f32.mrf.mxu1 }
 0x241   : > { %v351_v46 = vpop.xlane.xlu1 %350 }
 0x242   : > { %v352_v47 = vsub.f32 %v342_v41, %v351_v46 }
 0x244   : > { %v353_v48 = vmul.f32 1.442695, %v352_v47 }
 0x246   : > { %591 = vpow2.f32 %v353_v48 }
 0x253   : > { %v592_v49 = vpop.eup %591 }
 0x254   : > { %v355_v50 = vsel %vm348_vm2, %v592_v49, 0.0 }
 0x255   : > { %356 = vadd.xlane.f32.xlu1 %v355_v50 }
 0x2de   : > { %v357_v51 = vpop.xlane.xlu1 %356 }
 0x2df   : > { %593 = vrcp.f32 %v357_v51 }
 0x2ec   : > { %v594_v52 = vpop.eup %593 }
 0x2ed   : > { %v359_v53 = vmul.f32 %v594_v52, %v357_v51 }
 0x2ef   : > { %v360_v54 = vsub.f32 2.0, %v359_v53 }
 0x2f1   : > { %v361_v55 = vmul.f32 %v594_v52, %v360_v54 }
 0x2f3   : > { %v362_v56 = vmul.f32 %v592_v49, %v361_v55 }
 0x2f5   : > { %v363_v57 = vpack.c.bf16 %v362_v56, %v362_v56 }
 0x2f7   : > { %523 = vmatmul.mubr.msk.bf16.vlgmr.msra.gmra.mxu1 %vm233_vm1, %v363_v57 }
 0x3b7   : > { %v409_v58 = vpop.f32.mrf.mxu1 }
 0x3b9   : > { %v411_v59 = vpop.f32.mrf.mxu1 }
 0x3ba   : > { %v418_v60 = vcombine.low %v409_v58, %v411_v59 }
 0x3bb   : > { %v413_v61 = vpop.f32.mrf.mxu1 }
 0x3bc   : > { %420 = vst [vmem:[%s186_s27] sm:$0xff] %v418_v60 }
 0x3bd   : > { %v414_v62 = vpop.f32.mrf.mxu1 }
 0x3be   : > { %608 = shalt.err (!%p605_p5)
}
 0x3bf   : > { %s609_s9 = scalar_lea.hbm %s782_s4, 128  ;;  %s613_s18 = scalar_lea.hbm %s831_s3, 256 }
 0x3c0   : > { %p610_p6 = scmp.ne.s32.totalorder %s782_s4, %s609_s9  ;;  %p614_p10 = scmp.lt.s32.totalorder %s782_s4, %s831_s3 }
 0x3c1   : > { %p615_p11 = scmp.lt.s32.totalorder %s613_s18, %s609_s9 }
 0x3c2   : > { %p611_p7 = pnand %p610_p6, %p735_p4 }
 0x3c3   : > { %p616_p12 = por %p615_p11, %p614_p10 }
 0x3c4   : > { %p612_p9 = pneg %p611_p7 }
 0x3c6   : > { %p617_p13 = pnand %p616_p12, %p612_p9 }
 0x3c8   : > { %620 = shalt.err (!%p617_p13)
}
 0x3c9   : > { %531 = dma.vmem_to_hbm [thread:$0]  (%p735_p4), %s784_s28, 128, %s782_s4, %s422_s5  }
 0x3ca PF: > { %p537_p0 = scmp.ge.s32.totalorder %s671_s17, 2  ;;  %s448_s23 = sand.u32 1, %s651_s12  }
 0x3cb   : > { %s449_s26 = scalar_lea.sflag [#allocation4], %s448_s23 }
 0x3cc   : > { %p534_p1 = pnand %p537_p0, %p742_p8 }
 0x3ce   : > { %p535_p2 = pneg %p534_p1 }
 0x3d0   : > { %646 = dma.done.wait (%p535_p2), %s449_s26, 128  }
 0x3d1   : > { %648 = vsyncadd (%p535_p2), %s449_s26, 4294967168  ;;  %s16_s17 = sadd.s32 1, %s671_s17   ;;  %s834_s12 = smov %s655_s13 }
 0x3d2   : > { %p13_p3 = scmp.ge.s32.totalorder %s16_s17, 4   ;;  %s835_s13 = smov %s659_s14 }
 0x3d3   : > { %s836_s14 = smov %s748_s25  ;;  %s837_s15 = smov %s667_s16 }
 0x3d4   : > { %s838_s16 = smov %s840_s20  ;;  %15 = sbr.rel (!%p13_p3) target bundleno = 4 (0x4), region = 67 }
 0x3d9   :  { %454 = vsyncpa [#allocation4], 1 }
 0x3da   :  { %456 = vsyncpa [#allocation4 + $0x1], 1 }

</bundles_post_ra>
